<compile_context>
chip_gen: v7x
topology: tpu7x:2x2x1
jax: 0.10.0
libtpu: 0.0.40
codegen_flags: <defaults>
</compile_context>

<pallas_src>
import jax
import jax.numpy as jnp
from jax.experimental import pallas as pl
from jax.experimental.pallas import tpu as pltpu


def mnet_kernel(e1_ref, e2_ref, w_ref, b_ref, mem_ref, o_ref):
    d = e1_ref.shape[-1]                       # static feature width

    # f32 tiles from HBM; quantize to bf16 just before the MXU (free VPU work,
    # single-pass bf16xbf16 matmul with f32 accumulation on all generations).
    e1 = e1_ref[...].astype(jnp.bfloat16)
    e2 = e2_ref[...].astype(jnp.bfloat16)

    # Resident bf16 weights: rows [0:d] = W1 (for emb1), [d:2d] = W2 (for emb2).
    w1 = w_ref[0:d, :]
    w2 = w_ref[d:2 * d, :]

    # logits = [emb1 | emb2] @ W + b, without materializing the concat.
    logits = (jnp.dot(e1, w1, preferred_element_type=jnp.float32)
              + jnp.dot(e2, w2, preferred_element_type=jnp.float32)
              + b_ref[...])                    # f32 bias, broadcast over rows

    # Numerically-stable softmax over the key dimension (dim=1), f32 math.
    m = jnp.max(logits, axis=1, keepdims=True)
    e = jnp.exp(logits - m)
    att = e * pl.reciprocal(jnp.sum(e, axis=1, keepdims=True), approx=True)

    # relation_vec = att @ MemM (kept f32 to avoid quantizing att).
    o_ref[...] = jnp.dot(att, mem_ref[...],
                         preferred_element_type=jnp.float32).astype(o_ref.dtype)


def _choose_tile_b(B, block_b):
    """Batch tile: 1 step for small B, >=2 steps (v7x dual-TC) for large B."""
    if B <= 1024:
        return B                                   # single full-batch tile
    tile = min(block_b, pl.cdiv(B, 2))             # aim for exactly 2 steps
    return ((tile + 7) // 8) * 8                   # sublane-align partial tiles


def mnet_forward(emb1, emb2, key_w, key_b, mem_m, *, block_b=16384,
                 out_dtype=jnp.float32):
    """emb1, emb2: (B, dim) f32; key_w: (2*dim, 10); key_b: (10,); mem_m: (10, dim)."""
    B, dim = emb1.shape
    n_keys, dim_out = mem_m.shape
    assert dim_out == dim and key_w.shape == (2 * dim, n_keys)

    # Resident parameter buffers. Weights go bf16 (native MXU operand dtype);
    # bias and MemM stay f32 (bias added post-accumulation, second dot in f32).
    w_bf16 = key_w.astype(jnp.bfloat16)                       # (2*dim, n_keys)
    b_f32 = key_b.reshape(1, n_keys).astype(jnp.float32)      # (1, n_keys)
    mem_f32 = mem_m.astype(jnp.float32)                       # (n_keys, dim)

    tile_b = _choose_tile_b(B, block_b)
    grid = (pl.cdiv(B, tile_b),)

    cost = pl.CostEstimate(
        flops=int(6 * B * dim * n_keys),            # e@W1 + e@W2 + att@MemM
        transcendentals=int(B * n_keys),            # softmax exp
        bytes_accessed=int(2 * B * dim * 4          # emb1 + emb2 (f32 in)
                           + B * dim * 4            # output (f32)
                           + 2 * dim * n_keys * 2   # bf16 weights
                           + n_keys * 4             # bias
                           + n_keys * dim * 4),     # MemM
    )

    return pl.pallas_call(
        mnet_kernel,
        out_shape=jax.ShapeDtypeStruct((B, dim), out_dtype),
        grid_spec=pltpu.PrefetchScalarGridSpec(
            num_scalar_prefetch=0,
            grid=grid,
            in_specs=[
                pl.BlockSpec((tile_b, dim), lambda i: (i, 0)),        # emb1 tile (f32)
                pl.BlockSpec((tile_b, dim), lambda i: (i, 0)),        # emb2 tile (f32)
                pl.BlockSpec((2 * dim, n_keys), lambda i: (0, 0)),    # W1|W2 resident (bf16)
                pl.BlockSpec((1, n_keys), lambda i: (0, 0)),          # bias resident (f32)
                pl.BlockSpec((n_keys, dim), lambda i: (0, 0)),        # MemM resident (f32)
            ],
            out_specs=pl.BlockSpec((tile_b, dim), lambda i: (i, 0)),
        ),
        compiler_params=pltpu.CompilerParams(
            dimension_semantics=("parallel",)),
        cost_estimate=cost,
    )(emb1, emb2, w_bf16, b_f32, mem_f32)


def xavier_uniform(key, shape):
    """Matches torch.nn.init.xavier_uniform_ for a 2-D (fan_out, fan_in) tensor."""
    fan_out, fan_in = shape
    bound = (6.0 / (fan_in + fan_out)) ** 0.5
    return jax.random.uniform(key, shape, jnp.float32, -bound, bound)


def reference_forward(emb1, emb2, key_w, key_b, mem_m):
    x = jnp.concatenate([emb1, emb2], axis=1)
    logits = x @ key_w + key_b
    att = jax.nn.softmax(logits, axis=1)
    return att @ mem_m


def _bf16(x):
    return x.astype(jnp.bfloat16).astype(jnp.float32)


if __name__ == "__main__":
    # Small shapes consistent with the module.
    dim_atom, dim_graph = 8, 8
    dim = dim_atom + dim_graph          # 16
    batch = 8

    root = jax.random.PRNGKey(0)
    k_e1, k_e2, k_w, k_b, k_m = jax.random.split(root, 5)

    emb1 = jax.random.normal(k_e1, (batch, dim), jnp.float32)
    emb2 = jax.random.normal(k_e2, (batch, dim), jnp.float32)

    # KeyM: Linear(2*dim, 10): weight (10, 2*dim) xavier-uniform, bias (10,)
    keym_weight = xavier_uniform(k_w, (10, 2 * dim))      # PyTorch layout
    bias_bound = 1.0 / (2 * dim) ** 0.5
    keym_bias = jax.random.uniform(k_b, (10,), jnp.float32, -bias_bound, bias_bound)
    # MemM: (10, dim) xavier-uniform
    mem_m = xavier_uniform(k_m, (10, dim))

    key_w = keym_weight.T                                  # (2*dim, 10) for x @ W

    # --- shipped (tiny) shape ---
    out = jax.block_until_ready(mnet_forward(emb1, emb2, key_w, keym_bias, mem_m))
    assert out.shape == (batch, dim)

    # Tight check vs. a reference that sees the same bf16-quantized activations/weights.
    ref_q = reference_forward(_bf16(emb1), _bf16(emb2), _bf16(key_w), keym_bias, mem_m)
    assert jnp.allclose(out, ref_q, atol=2e-3, rtol=2e-3), "mismatch vs bf16-quantized reference"

    # Looser check vs. the pure-f32 PyTorch-equivalent reference (bf16 quantization error only).
    ref_f32 = reference_forward(emb1, emb2, key_w, keym_bias, mem_m)
    assert jnp.allclose(out, ref_f32, atol=3e-2, rtol=3e-2), "mismatch vs f32 reference"

    # --- larger batch to exercise the tiled / multi-step (parallel) grid path ---
    big_b = 4096
    kb1, kb2 = jax.random.split(jax.random.PRNGKey(1), 2)
    bemb1 = jax.random.normal(kb1, (big_b, dim), jnp.float32)
    bemb2 = jax.random.normal(kb2, (big_b, dim), jnp.float32)
    bout = jax.block_until_ready(mnet_forward(bemb1, bemb2, key_w, keym_bias, mem_m))
    bref = reference_forward(_bf16(bemb1), _bf16(bemb2), _bf16(key_w), keym_bias, mem_m)
    assert bout.shape == (big_b, dim)
    assert jnp.allclose(bout, bref, atol=2e-3, rtol=2e-3), "mismatch at large batch"

    print("KERNEL_OK")
</pallas_src>

<mosaic_0001>
module attributes {stable_mosaic.version = 11 : i64} {
  func.func @mnet_kernel(%arg0: i32, %arg1: memref<8x16xf32, #tpu.memory_space<vmem>>, %arg2: memref<8x16xf32, #tpu.memory_space<vmem>>, %arg3: memref<32x10xbf16, #tpu.memory_space<vmem>>, %arg4: memref<1x10xf32, #tpu.memory_space<vmem>>, %arg5: memref<10x16xf32, #tpu.memory_space<vmem>>, %arg6: memref<8x16xf32, #tpu.memory_space<vmem>>) attributes {dimension_semantics = [#tpu.dimension_semantics<parallel>], iteration_bounds = array<i64: 1>, scalar_prefetch = 0 : i64, scratch_operands = 0 : i64, tpu.core_type = #tpu.core_type<tc>, window_params = [{transform_indices = @transform_0, window_bounds = array<i64: 8, 16>}, {transform_indices = @transform_1, window_bounds = array<i64: 8, 16>}, {pipeline_mode = #tpu.pipeline_mode<synchronous>, transform_indices = @transform_2, window_bounds = array<i64: 32, 10>}, {pipeline_mode = #tpu.pipeline_mode<synchronous>, transform_indices = @transform_3, window_bounds = array<i64: 1, 10>}, {pipeline_mode = #tpu.pipeline_mode<synchronous>, transform_indices = @transform_4, window_bounds = array<i64: 10, 16>}, {transform_indices = @transform_5, window_bounds = array<i64: 8, 16>}]} {
    %c0 = arith.constant 0 : index
    %c0_0 = arith.constant 0 : index
    %0 = vector.load %arg1[%c0, %c0_0] : memref<8x16xf32, #tpu.memory_space<vmem>>, vector<8x16xf32>
    %1 = arith.truncf %0 : vector<8x16xf32> to vector<8x16xbf16>
    %c0_1 = arith.constant 0 : index
    %c0_2 = arith.constant 0 : index
    %2 = vector.load %arg2[%c0_1, %c0_2] : memref<8x16xf32, #tpu.memory_space<vmem>>, vector<8x16xf32>
    %3 = arith.truncf %2 : vector<8x16xf32> to vector<8x16xbf16>
    %c0_3 = arith.constant 0 : index
    %c0_4 = arith.constant 0 : index
    %4 = vector.load %arg3[%c0_3, %c0_4] : memref<32x10xbf16, #tpu.memory_space<vmem>>, vector<16x10xbf16>
    %c16 = arith.constant 16 : index
    %c0_5 = arith.constant 0 : index
    %5 = vector.load %arg3[%c16, %c0_5] : memref<32x10xbf16, #tpu.memory_space<vmem>>, vector<16x10xbf16>
    %cst = arith.constant dense<0.000000e+00> : vector<8x10xf32>
    %6 = tpu.matmul %1, %4, %cst {dimension_numbers = #tpu.dot_dimension_numbers<[1], [0], [0], [1], [0, 0, 1, 1], [], []>} : vector<8x16xbf16>, vector<16x10xbf16>, vector<8x10xf32> -> vector<8x10xf32>
    %cst_6 = arith.constant dense<0.000000e+00> : vector<8x10xf32>
    %7 = tpu.matmul %3, %5, %cst_6 {dimension_numbers = #tpu.dot_dimension_numbers<[1], [0], [0], [1], [0, 0, 1, 1], [], []>} : vector<8x16xbf16>, vector<16x10xbf16>, vector<8x10xf32> -> vector<8x10xf32>
    %8 = arith.addf %6, %7 : vector<8x10xf32>
    %c0_7 = arith.constant 0 : index
    %c0_8 = arith.constant 0 : index
    %9 = vector.load %arg4[%c0_7, %c0_8] : memref<1x10xf32, #tpu.memory_space<vmem>>, vector<1x10xf32>
    %10 = vector.broadcast %9 : vector<1x10xf32> to vector<8x10xf32>
    %11 = arith.addf %8, %10 : vector<8x10xf32>
    %cst_9 = arith.constant dense<0xFF800000> : vector<8xf32>
    %12 = vector.multi_reduction <maximumf>, %11, %cst_9 [1] : vector<8x10xf32> to vector<8xf32>
    %13 = vector.shape_cast %12 : vector<8xf32> to vector<8x1xf32>
    %14 = vector.broadcast %13 : vector<8x1xf32> to vector<8x10xf32>
    %15 = arith.subf %11, %14 : vector<8x10xf32>
    %16 = math.exp %15 : vector<8x10xf32>
    %cst_10 = arith.constant dense<0.000000e+00> : vector<8xf32>
    %17 = vector.multi_reduction <add>, %16, %cst_10 [1] : vector<8x10xf32> to vector<8xf32>
    %18 = vector.shape_cast %17 : vector<8xf32> to vector<8x1xf32>
    %19 = tpu.reciprocal %18 {approx = true} : vector<8x1xf32> -> vector<8x1xf32>
    %20 = vector.broadcast %19 : vector<8x1xf32> to vector<8x10xf32>
    %21 = arith.mulf %16, %20 : vector<8x10xf32>
    %c0_11 = arith.constant 0 : index
    %c0_12 = arith.constant 0 : index
    %22 = vector.load %arg5[%c0_11, %c0_12] : memref<10x16xf32, #tpu.memory_space<vmem>>, vector<10x16xf32>
    %cst_13 = arith.constant dense<0.000000e+00> : vector<8x16xf32>
    %23 = tpu.matmul %21, %22, %cst_13 {dimension_numbers = #tpu.dot_dimension_numbers<[1], [0], [0], [1], [0, 0, 1, 1], [], []>} : vector<8x10xf32>, vector<10x16xf32>, vector<8x16xf32> -> vector<8x16xf32>
    %c0_14 = arith.constant 0 : index
    %c0_15 = arith.constant 0 : index
    %24 = vector.load %arg6[%c0_14, %c0_15] : memref<8x16xf32, #tpu.memory_space<vmem>>, vector<8x16xf32>
    tpu.vector_store %arg6[%c0_14, %c0_15], %23 {strides = array<i32>} : memref<8x16xf32, #tpu.memory_space<vmem>>, vector<8x16xf32>,
    return
  }
  func.func @transform_0(%arg0: i32) -> (i32, i32) {
    %c0_i32 = arith.constant 0 : i32
    %c0_i32_0 = arith.constant 0 : i32
    return %arg0, %c0_i32 : i32, i32
  }
  func.func @transform_1(%arg0: i32) -> (i32, i32) {
    %c0_i32 = arith.constant 0 : i32
    %c0_i32_0 = arith.constant 0 : i32
    return %arg0, %c0_i32 : i32, i32
  }
  func.func @transform_2(%arg0: i32) -> (i32, i32) {
    %c0_i32 = arith.constant 0 : i32
    %c0_i32_0 = arith.constant 0 : i32
    %c0_i32_1 = arith.constant 0 : i32
    return %c0_i32, %c0_i32_0 : i32, i32
  }
  func.func @transform_3(%arg0: i32) -> (i32, i32) {
    %c0_i32 = arith.constant 0 : i32
    %c0_i32_0 = arith.constant 0 : i32
    %c0_i32_1 = arith.constant 0 : i32
    return %c0_i32, %c0_i32_0 : i32, i32
  }
  func.func @transform_4(%arg0: i32) -> (i32, i32) {
    %c0_i32 = arith.constant 0 : i32
    %c0_i32_0 = arith.constant 0 : i32
    %c0_i32_1 = arith.constant 0 : i32
    return %c0_i32, %c0_i32_0 : i32, i32
  }
  func.func @transform_5(%arg0: i32) -> (i32, i32) {
    %c0_i32 = arith.constant 0 : i32
    %c0_i32_0 = arith.constant 0 : i32
    return %arg0, %c0_i32 : i32, i32
  }
}

</mosaic_0001>

<bundles_post_ra>
// kernel: tpu_custom_call.1
= control target key start
LH: loop header
LB: loop body
LE: loop exit
PB: predicated region body
PF: predicated region fallthrough
CT: control target
= control target key end

     0   :  { %10 = vsyncpa [#allocation3], 0  ;;  %s437_s0 = inlined_call_operand.vmem [shape: f32[8,16], index: 0, kind: input, shape index: {}]   ;;  %s438_s1 = inlined_call_operand.hbm [shape: f32[8,16], index: 1, kind: input, shape index: {}]   ;;  %s439_s2 = inlined_call_operand.vmem [shape: bf16[32,10], index: 2, kind: input, shape index: {}]   ;;  %s440_s3 = inlined_call_operand.vmem [shape: f32[1,10], index: 3, kind: input, shape index: {}]   ;;  %s441_s4 = inlined_call_operand.vmem [shape: f32[10,16], index: 4, kind: input, shape index: {}]   ;;  %s442_s5 = inlined_call_operand.hbm [shape: f32[8,16], index: 5, kind: output, shape index: {}]  }
   0x1   :  { %11 = vsyncpa [#allocation4], 0  ;;  %s353_s18 = smov [#allocation2]   ;;  %s305_s22 = scalar_lea.hbm %s438_s1, 128 }
   0x2   :  { %s20_s19 = sshll.u32 %s353_s18, 4  ;;  %p306_p0 = scmp.ne.s32.totalorder %s438_s1, %s305_s22  ;;  %s21_s19 = int_to_ptr.vmem [resolvable:$true] %s20_s19 }
   0x3   :  { %p309_p1 = scmp.lt.u32.totalorder %s305_s22, %s438_s1 }
   0x5   :  { %p311_p2 = pnand %p309_p1, %p306_p0 }
   0x7   :  { %314 = shalt.err (!%p311_p2)
}
   0x8   :  { %s315_s27 = scalar_lea.vmem %s21_s19, 128  ;;  %p320_p4 = scmp.lt.s32.totalorder %s21_s19, %s21_s19 }
   0x9   :  { %p316_p3 = scmp.ne.s32.totalorder %s21_s19, %s315_s27  ;;  %p321_p5 = scmp.lt.s32.totalorder %s315_s27, %s315_s27 }
   0xb   :  { %p322_p6 = por %p321_p5, %p320_p4 }
   0xd   :  { %p323_p7 = pnand %p322_p6, %p316_p3 }
   0xf   :  { %326 = shalt.err (!%p323_p7)
}
  0x10   :  { %23 = dma.hbm_to_vmem [thread:$0]  %s438_s1, 128, %s21_s19, [#allocation3]  }
  0x11   :  { %349 = dma.done.wait [#allocation3], 128  }
  0x12   :  { %350 = vsyncadd [#allocation3], 4294967168  ;;  %v354_v0 = vmov 0.0   ;;  %vm355_vm0 = vmmov 0   ;;  %v299_v1 = vld [vmem:[%s439_s2 + $0x8] sm:$0xff]   ;;  %v300_v2 = vld [vmem:[%s439_s2] sm:$0xff]  }
  0x13   :  { %270 = vmatprep.subr.bf16.mxu0 %v354_v0  ;;  %276 = vmatprep.subr.bf16.mxu1 %v354_v0  ;;  %v36_v3 = vld [vmem:[#allocation2] sm:$0xff]  ;;  %vm48_vm1 = vcmask 130048   ;;  %vm149_vm2 = vcmask 80896   ;;  %v162_v25 = vld [vmem:[%s441_s4 + $0x8] sm:$0x3]  ;;  %vm166_vm3 = vcmask 1041408  }
  0x14   :  { %272 = vmatprep.mubr.msk.bf16.mxu0 %vm355_vm0, %v354_v0  ;;  %278 = vmatprep.mubr.msk.bf16.mxu1 %vm355_vm0, %v354_v0  ;;  %v34_v4 = vld [vmem:[%s437_s0] sm:$0xff]  ;;  %v37_v5 = vpack.c.bf16 %v36_v3, %v36_v3  ;;  %v356_v27 = vmov 0.0|0.0   ;;  %vm357_vm4 = vmmov 1   ;;  %s358_s13 = smov [#allocation5]  }
  0x15   :  { %271 = vmatpush3.bf16.msra.mxu0 %v299_v1  ;;  %277 = vmatpush3.bf16.msra.mxu1 %v300_v2  ;;  %v35_v6 = vpack.c.bf16 %v34_v4, %v34_v4  ;;  %v260_v10 = vld [vmem:[%s440_s3] ss:$0 sm:$0xff]  ;;  %vm291_vm5 = vmpackc.low %vm166_vm3, %vm357_vm4  ;;  %s247_s14 = sshll.u32 %s358_s13, 4  ;;  %s248_s14 = int_to_ptr.vmem [resolvable:$true] %s247_s14 }
  0x16   :  { %v161_v24 = vld [vmem:[%s441_s4] sm:$0xff]  ;;  %289 = vmatprep.subr.bf16.mxu0 %v356_v27  ;;  %s327_s4 = scalar_lea.vmem %s248_s14, 128  ;;  %p332_p9 = scmp.lt.s32.totalorder %s248_s14, %s248_s14 }
  0x17   :  { %v290_v26 = vpack.c.bf16 %v162_v25, %v161_v24  ;;  %p328_p8 = scmp.ne.s32.totalorder %s248_s14, %s327_s4  ;;  %p333_p10 = scmp.lt.s32.totalorder %s327_s4, %s327_s4 }
  0x18   :  { %273 = vmatmul.mubr.msk.bf16.vlgmr.msra.gmra.mrb[0].mxu0 %vm48_vm1, %v37_v5  ;;  %279 = vmatmul.mubr.msk.bf16.vlgmr.msra.gmra.mrb[0].mxu1 %vm48_vm1, %v35_v6 }
  0x19   :  { %286 = vmatprep.mubr.msk.f32.mxu0 %vm355_vm0, %v354_v0  ;;  %292 = vmatpush3.bf16.msk.msra.mxu0 %vm291_vm5, %v290_v26  ;;  %p334_p11 = por %p333_p10, %p332_p9 }
  0x1b   :  { %p335_p12 = pnand %p334_p11, %p328_p8 }
  0xeb   :  { %v86_v7 = vpop.f32.mrb[0].mxu0  ;;  %v135_v8 = vpop.f32.mrb[0].mxu1 }
  0xec   :  { %v274_v9 = vpop.f32.mrb[1].mxu0  ;;  %v136_v11 = vadd.f32 %v135_v8, %v86_v7  ;;  %v280_v12 = vpop.f32.mrb[1].mxu1 }
  0xed   :  { %v89_v13 = vpop.f32.mrb[2].mxu0  ;;  %v138_v14 = vpop.f32.mrb[2].mxu1 }
  0xee   :  { %v275_v15 = vpop.f32.mrb[3].mxu0  ;;  %v281_v16 = vpop.f32.mrb[3].mxu1  ;;  %v148_v17 = vadd.f32 %v260_v10, %v136_v11 }
  0xf0   :  { %v150_v18 = vsel %vm149_vm2, %v148_v17, -inf }
  0xf1   :  { %151 = vmax.xlane.f32.xlu0 %v150_v18 }
 0x17e   :  { %v152_v19 = vpop.xlane.xlu0 %151 }
 0x17f   :  { %v153_v20 = vsub.f32 %v148_v17, %v152_v19 }
 0x181   :  { %v154_v21 = vmul.f32 1.442695, %v153_v20 }
 0x183   :  { %301 = vpow2.f32 %v154_v21 }
 0x18d   :  { %v302_v22 = vpop.eup %301 }
 0x18e   :  { %v156_v23 = vsel %vm149_vm2, %v302_v22, 0.0 }
 0x18f   :  { %157 = vadd.xlane.f32.xlu0 %v156_v23 }
 0x21c   :  { %v158_v28 = vpop.xlane.xlu0 %157 }
 0x21d   :  { %303 = vrcp.f32 %v158_v28 }
 0x227   :  { %v304_v29 = vpop.eup %303 }
 0x228   :  { %v160_v30 = vmul.f32 %v304_v29, %v302_v22 }
 0x22a   :  { %287 = vmatmul.mubr.msk.f32.vlgmr.msra.gmra.mrb[4].mxu0 %vm149_vm2, %v160_v30 }
 0x2fd   :  { %v236_v31 = vpop.f32.mrb[4].mxu0 }
 0x2fe   :  { %240 = vst.msk [vmem:[#allocation5] sm:$0xff] %vm48_vm1, %v236_v31  ;;  %v288_v32 = vpop.f32.mrb[5].mxu0 }
 0x2ff   :  { %338 = shalt.err (!%p335_p12)
}
 0x300   :  { %s339_s17 = scalar_lea.hbm %s442_s5, 128 }
 0x301   :  { %p340_p13 = scmp.ne.s32.totalorder %s442_s5, %s339_s17  ;;  %p343_p0 = scmp.lt.u32.totalorder %s339_s17, %s442_s5 }
 0x303   :  { %p345_p1 = pnand %p343_p0, %p340_p13 }
 0x305   :  { %348 = shalt.err (!%p345_p1)
}
 0x306   :  { %250 = dma.vmem_to_hbm [thread:$0]  %s248_s14, 128, %s442_s5, [#allocation4]  }
 0x307   :  { %351 = dma.done.wait [#allocation4], 128  }
 0x308   :  { %352 = vsyncadd [#allocation4], 4294967168 }
 0x309   :  { %254 = vsyncpa [#allocation3], 1 }
 0x30a   :  { %255 = vsyncpa [#allocation4], 1 }

</bundles_post_ra>
